<compile_context>
chip_gen: v5e
topology: v5e:2x2
jax: 0.10.0
libtpu: 0.0.40
codegen_flags: <defaults>
</compile_context>

<pallas_src>
import math

import jax
import jax.numpy as jnp
from jax.experimental import pallas as pl
from jax.experimental.pallas import tpu as pltpu


LANE = 128            # TPU vreg lane width — task outputs padded to this for dense stores
SUBLANE = 8           # TPU vreg sublane count — row tile kept a multiple of this
LN_EPS = 1e-5         # PyTorch nn.LayerNorm default eps


def _layer_norm(h, gamma, beta):
    mu = jnp.mean(h, axis=-1, keepdims=True)
    var = jnp.mean((h - mu) ** 2, axis=-1, keepdims=True)
    return (h - mu) * jax.lax.rsqrt(var + LN_EPS) * gamma + beta


def _make_kernel(shared_layers, task_meta):
    """task_meta: static tuple of (num_layers, apply_sigmoid, col_off, col_pad) per task."""

    def kernel(x_ref, *refs):
        out_ref = refs[-1]
        param_refs = refs[:-1]
        it = iter(param_refs)

        h = x_ref[...]
        if h.dtype != jnp.float32:
            h = h.astype(jnp.float32)

        # ---- shared network: (Linear -> LayerNorm -> ReLU -> Dropout) x shared_layers ----
        for _ in range(shared_layers):
            w = next(it)[...]        # [H, H]  (in, out) — pre-transposed in wrapper
            b = next(it)[...]        # [1, H]
            g = next(it)[...]        # [1, H]
            be = next(it)[...]       # [1, H]
            h = jnp.dot(h, w, preferred_element_type=jnp.float32) + b
            h = _layer_norm(h, g, be)
            h = jnp.maximum(h, 0.0)
            # TODO(synk): dropout omitted (inference behaviour — identity)

        # ---- task-specific heads (TemporalPredictionHead) ----
        for (num_layers, apply_sigmoid, off, opad) in task_meta:
            y = h
            for li in range(num_layers):
                w = next(it)[...]    # [K, N] (in, out); final layer N lane-padded to 128k
                b = next(it)[...]    # [1, N]
                y = jnp.dot(y, w, preferred_element_type=jnp.float32) + b
                if li < num_layers - 1:
                    g = next(it)[...]
                    be = next(it)[...]
                    y = _layer_norm(y, g, be)
                    y = jnp.maximum(y, 0.0)
                    # TODO(synk): dropout omitted (inference behaviour — identity)
            if apply_sigmoid:
                y = 1.0 / (1.0 + jnp.exp(-y))     # Sigmoid output activation
            # 128-aligned static column offset -> full-lane-width unmasked store.
            out_ref[:, off:off + opad] = y.astype(out_ref.dtype)

    return kernel


def multitask_forward(x, params, task_configs, *, row_tile=None, interpret=False):
    """x: [B, S, H]. Returns dict task_name -> predictions [B, S, output_dim]."""
    B, S, H = x.shape
    task_names = list(task_configs.keys())
    shared_layers = len(params['shared'])

    # ---- host-side (one-time) param prep: transpose to [in, out], pad final outputs ----
    args = []
    for layer in params['shared']:
        args += [layer['w'].T,                       # [H, H] (in, out)
                 layer['b'].reshape(1, -1),
                 layer['gamma'].reshape(1, -1),
                 layer['beta'].reshape(1, -1)]

    task_meta, out_dims = [], []
    col_off = 0
    for name in task_names:
        cfg = task_configs[name]
        O = cfg.get('output_dim', 1)
        task_type = cfg.get('task_type', 'classification')
        num_layers = cfg.get('num_layers', 1)
        O_pad = ((O + LANE - 1) // LANE) * LANE      # lane-dense output width
        for li, layer in enumerate(params['tasks'][name]):
            w = layer['w'].T                         # [in, out]
            b = layer['b'].reshape(1, -1)
            if li == num_layers - 1:
                w = jnp.pad(w, ((0, 0), (0, O_pad - O)))
                b = jnp.pad(b, ((0, 0), (0, O_pad - O)))
            args += [w, b]
            if li < num_layers - 1:
                args += [layer['gamma'].reshape(1, -1), layer['beta'].reshape(1, -1)]
        task_meta.append((num_layers,
                          task_type in ('classification', 'multi_label'),
                          col_off, O_pad))
        out_dims.append(O)
        col_off += O_pad
    total_pad = col_off                              # width of the combined output slab

    # ---- flatten [B, S, H] -> [M, H]; pick a row tile (multiple of 8, fits VMEM) ----
    M = B * S
    x2 = x.reshape(M, H)
    if row_tile is None:
        # rough f32 working set per row (input/activations + output, double-buffered)
        per_row = 4 * (6 * H + 3 * total_pad)
        row_tile = (8 << 20) // max(per_row, 1)      # ~8 MiB budget (fits v7x 64 MiB VMEM)
        row_tile = min(row_tile, 1024, ((M + SUBLANE - 1) // SUBLANE) * SUBLANE)
    TM = max(SUBLANE, (int(row_tile) // SUBLANE) * SUBLANE)
    Mp = ((M + TM - 1) // TM) * TM
    if Mp != M:
        x2 = jnp.pad(x2, ((0, Mp - M), (0, 0)))
    grid = (Mp // TM,)

    # ---- specs: x tiled over rows, weights resident (constant block index) ----
    in_specs = [pl.BlockSpec((TM, H), lambda i: (i, 0))]
    in_specs += [pl.BlockSpec(a.shape, lambda i: (0, 0)) for a in args]   # all params are 2-D
    out_shape = jax.ShapeDtypeStruct((Mp, total_pad), jnp.float32)
    out_specs = pl.BlockSpec((TM, total_pad), lambda i: (i, 0))

    kernel = _make_kernel(shared_layers, tuple(task_meta))

    out = pl.pallas_call(
        kernel,
        out_shape=out_shape,
        grid=grid,
        in_specs=in_specs,
        out_specs=out_specs,
        compiler_params=pltpu.CompilerParams(
            dimension_semantics=("parallel",),       # row axis -> both TCs on v7x
            vmem_limit_bytes=32 * 1024 * 1024,
        ),
        interpret=interpret,
    )(x2, *args)

    # Slice away row padding and each task's lane padding, restore [B, S, O].
    preds = {}
    for t, name in enumerate(task_names):
        _, _, off, _ = task_meta[t]
        O = out_dims[t]
        preds[name] = out[:M, off:off + O].reshape(B, S, O)
    return preds


def init_params(key, hidden_dim, task_configs, shared_layers=1):
    """Deterministic Xavier-uniform init; PyTorch-style [out, in] Linear weights."""
    def xavier(k, out_f, in_f):
        bound = math.sqrt(6.0 / (in_f + out_f))
        return jax.random.uniform(k, (out_f, in_f), jnp.float32, -bound, bound)

    keys = iter(jax.random.split(key, 128))
    H = hidden_dim
    shared = []
    for _ in range(shared_layers):
        shared.append({'w': xavier(next(keys), H, H),
                       'b': jnp.zeros((H,), jnp.float32),
                       'gamma': jnp.ones((H,), jnp.float32),
                       'beta': jnp.zeros((H,), jnp.float32)})
    tasks = {}
    for name, cfg in task_configs.items():
        O = cfg.get('output_dim', 1)
        num_layers = cfg.get('num_layers', 1)
        layers = []
        for li in range(num_layers):
            out_f = O if li == num_layers - 1 else H
            layer = {'w': xavier(next(keys), out_f, H),
                     'b': jnp.zeros((out_f,), jnp.float32)}
            if li < num_layers - 1:
                layer['gamma'] = jnp.ones((out_f,), jnp.float32)
                layer['beta'] = jnp.zeros((out_f,), jnp.float32)
            layers.append(layer)
        tasks[name] = layers
    return {'shared': shared, 'tasks': tasks}


def _reference_forward(x, params, task_configs):
    """Pure-JAX reference mirroring the PyTorch module (inference)."""
    def ln(h, g, b):
        mu = jnp.mean(h, axis=-1, keepdims=True)
        var = jnp.mean((h - mu) ** 2, axis=-1, keepdims=True)
        return (h - mu) / jnp.sqrt(var + LN_EPS) * g + b

    h = x
    for layer in params['shared']:
        h = jnp.einsum('bsh,oh->bso', h, layer['w']) + layer['b']
        h = jax.nn.relu(ln(h, layer['gamma'], layer['beta']))
    preds = {}
    for name, cfg in task_configs.items():
        num_layers = cfg.get('num_layers', 1)
        y = h
        for li, layer in enumerate(params['tasks'][name]):
            y = jnp.einsum('bsh,oh->bso', y, layer['w']) + layer['b']
            if li < num_layers - 1:
                y = jax.nn.relu(ln(y, layer['gamma'], layer['beta']))
        if cfg.get('task_type', 'classification') in ('classification', 'multi_label'):
            y = jax.nn.sigmoid(y)
        preds[name] = y
    return preds


if __name__ == "__main__":
    B, S, H = 2, 8, 32
    task_configs = {
        'event': {'output_dim': 1, 'task_type': 'classification', 'num_layers': 2},
        'value': {'output_dim': 4, 'task_type': 'regression', 'num_layers': 2},
        'risk':  {'output_dim': 3, 'task_type': 'multi_label', 'num_layers': 1},
    }

    key = jax.random.PRNGKey(0)
    k_x, k_p = jax.random.split(key)
    x = jax.random.normal(k_x, (B, S, H), jnp.float32)
    params = init_params(k_p, H, task_configs, shared_layers=1)

    preds = multitask_forward(x, params, task_configs)
    preds = {k: jax.block_until_ready(v) for k, v in preds.items()}

    refs = _reference_forward(x, params, task_configs)
    for name, cfg in task_configs.items():
        assert preds[name].shape == (B, S, cfg['output_dim'])
        assert jnp.allclose(preds[name], refs[name], atol=1e-4, rtol=1e-4), name

    print("KERNEL_OK")
</pallas_src>

<mosaic_0001>
module attributes {stable_mosaic.version = 11 : i64} {
  func.func @kernel(%arg0: i32, %arg1: memref<16x32xf32, #tpu.memory_space<vmem>>, %arg2: memref<32x32xf32, #tpu.memory_space<vmem>>, %arg3: memref<1x32xf32, #tpu.memory_space<vmem>>, %arg4: memref<1x32xf32, #tpu.memory_space<vmem>>, %arg5: memref<1x32xf32, #tpu.memory_space<vmem>>, %arg6: memref<32x32xf32, #tpu.memory_space<vmem>>, %arg7: memref<1x32xf32, #tpu.memory_space<vmem>>, %arg8: memref<1x32xf32, #tpu.memory_space<vmem>>, %arg9: memref<1x32xf32, #tpu.memory_space<vmem>>, %arg10: memref<32x128xf32, #tpu.memory_space<vmem>>, %arg11: memref<1x128xf32, #tpu.memory_space<vmem>>, %arg12: memref<32x32xf32, #tpu.memory_space<vmem>>, %arg13: memref<1x32xf32, #tpu.memory_space<vmem>>, %arg14: memref<1x32xf32, #tpu.memory_space<vmem>>, %arg15: memref<1x32xf32, #tpu.memory_space<vmem>>, %arg16: memref<32x128xf32, #tpu.memory_space<vmem>>, %arg17: memref<1x128xf32, #tpu.memory_space<vmem>>, %arg18: memref<32x128xf32, #tpu.memory_space<vmem>>, %arg19: memref<1x128xf32, #tpu.memory_space<vmem>>, %arg20: memref<16x384xf32, #tpu.memory_space<vmem>>) attributes {dimension_semantics = [#tpu.dimension_semantics<parallel>], iteration_bounds = array<i64: 1>, scalar_prefetch = 0 : i64, scratch_operands = 0 : i64, tpu.core_type = #tpu.core_type<tc>, window_params = [{transform_indices = @transform_0, window_bounds = array<i64: 16, 32>}, {pipeline_mode = #tpu.pipeline_mode<synchronous>, transform_indices = @transform_1, window_bounds = array<i64: 32, 32>}, {pipeline_mode = #tpu.pipeline_mode<synchronous>, transform_indices = @transform_2, window_bounds = array<i64: 1, 32>}, {pipeline_mode = #tpu.pipeline_mode<synchronous>, transform_indices = @transform_3, window_bounds = array<i64: 1, 32>}, {pipeline_mode = #tpu.pipeline_mode<synchronous>, transform_indices = @transform_4, window_bounds = array<i64: 1, 32>}, {pipeline_mode = #tpu.pipeline_mode<synchronous>, transform_indices = @transform_5, window_bounds = array<i64: 32, 32>}, {pipeline_mode = #tpu.pipeline_mode<synchronous>, transform_indices = @transform_6, window_bounds = array<i64: 1, 32>}, {pipeline_mode = #tpu.pipeline_mode<synchronous>, transform_indices = @transform_7, window_bounds = array<i64: 1, 32>}, {pipeline_mode = #tpu.pipeline_mode<synchronous>, transform_indices = @transform_8, window_bounds = array<i64: 1, 32>}, {pipeline_mode = #tpu.pipeline_mode<synchronous>, transform_indices = @transform_9, window_bounds = array<i64: 32, 128>}, {pipeline_mode = #tpu.pipeline_mode<synchronous>, transform_indices = @transform_10, window_bounds = array<i64: 1, 128>}, {pipeline_mode = #tpu.pipeline_mode<synchronous>, transform_indices = @transform_11, window_bounds = array<i64: 32, 32>}, {pipeline_mode = #tpu.pipeline_mode<synchronous>, transform_indices = @transform_12, window_bounds = array<i64: 1, 32>}, {pipeline_mode = #tpu.pipeline_mode<synchronous>, transform_indices = @transform_13, window_bounds = array<i64: 1, 32>}, {pipeline_mode = #tpu.pipeline_mode<synchronous>, transform_indices = @transform_14, window_bounds = array<i64: 1, 32>}, {pipeline_mode = #tpu.pipeline_mode<synchronous>, transform_indices = @transform_15, window_bounds = array<i64: 32, 128>}, {pipeline_mode = #tpu.pipeline_mode<synchronous>, transform_indices = @transform_16, window_bounds = array<i64: 1, 128>}, {pipeline_mode = #tpu.pipeline_mode<synchronous>, transform_indices = @transform_17, window_bounds = array<i64: 32, 128>}, {pipeline_mode = #tpu.pipeline_mode<synchronous>, transform_indices = @transform_18, window_bounds = array<i64: 1, 128>}, {transform_indices = @transform_19, window_bounds = array<i64: 16, 384>}]} {
    %c0 = arith.constant 0 : index
    %c0_0 = arith.constant 0 : index
    %0 = vector.load %arg1[%c0, %c0_0] : memref<16x32xf32, #tpu.memory_space<vmem>>, vector<16x32xf32>
    %c0_1 = arith.constant 0 : index
    %c0_2 = arith.constant 0 : index
    %1 = vector.load %arg2[%c0_1, %c0_2] : memref<32x32xf32, #tpu.memory_space<vmem>>, vector<32x32xf32>
    %c0_3 = arith.constant 0 : index
    %c0_4 = arith.constant 0 : index
    %2 = vector.load %arg3[%c0_3, %c0_4] : memref<1x32xf32, #tpu.memory_space<vmem>>, vector<1x32xf32>
    %c0_5 = arith.constant 0 : index
    %c0_6 = arith.constant 0 : index
    %3 = vector.load %arg4[%c0_5, %c0_6] : memref<1x32xf32, #tpu.memory_space<vmem>>, vector<1x32xf32>
    %c0_7 = arith.constant 0 : index
    %c0_8 = arith.constant 0 : index
    %4 = vector.load %arg5[%c0_7, %c0_8] : memref<1x32xf32, #tpu.memory_space<vmem>>, vector<1x32xf32>
    %cst = arith.constant dense<0.000000e+00> : vector<16x32xf32>
    %5 = tpu.matmul %0, %1, %cst {dimension_numbers = #tpu.dot_dimension_numbers<[1], [0], [0], [1], [0, 0, 1, 1], [], []>} : vector<16x32xf32>, vector<32x32xf32>, vector<16x32xf32> -> vector<16x32xf32>
    %6 = vector.broadcast %2 : vector<1x32xf32> to vector<16x32xf32>
    %7 = arith.addf %5, %6 : vector<16x32xf32>
    %cst_9 = arith.constant dense<0.000000e+00> : vector<16xf32>
    %8 = vector.multi_reduction <add>, %7, %cst_9 [1] : vector<16x32xf32> to vector<16xf32>
    %9 = vector.shape_cast %8 : vector<16xf32> to vector<16x1xf32>
    %cst_10 = arith.constant 3.200000e+01 : f32
    %10 = vector.broadcast %cst_10 : f32 to vector<16x1xf32>
    %11 = arith.divf %9, %10 : vector<16x1xf32>
    %12 = vector.broadcast %11 : vector<16x1xf32> to vector<16x32xf32>
    %13 = arith.subf %7, %12 : vector<16x32xf32>
    %14 = arith.mulf %13, %13 : vector<16x32xf32>
    %cst_11 = arith.constant dense<0.000000e+00> : vector<16xf32>
    %15 = vector.multi_reduction <add>, %14, %cst_11 [1] : vector<16x32xf32> to vector<16xf32>
    %16 = vector.shape_cast %15 : vector<16xf32> to vector<16x1xf32>
    %cst_12 = arith.constant 3.200000e+01 : f32
    %17 = vector.broadcast %cst_12 : f32 to vector<16x1xf32>
    %18 = arith.divf %16, %17 : vector<16x1xf32>
    %19 = vector.broadcast %11 : vector<16x1xf32> to vector<16x32xf32>
    %20 = arith.subf %7, %19 : vector<16x32xf32>
    %cst_13 = arith.constant 9.99999974E-6 : f32
    %21 = vector.broadcast %cst_13 : f32 to vector<16x1xf32>
    %22 = arith.addf %18, %21 : vector<16x1xf32>
    %23 = math.rsqrt %22 : vector<16x1xf32>
    %24 = vector.broadcast %23 : vector<16x1xf32> to vector<16x32xf32>
    %25 = arith.mulf %20, %24 : vector<16x32xf32>
    %26 = vector.broadcast %3 : vector<1x32xf32> to vector<16x32xf32>
    %27 = arith.mulf %25, %26 : vector<16x32xf32>
    %28 = vector.broadcast %4 : vector<1x32xf32> to vector<16x32xf32>
    %29 = arith.addf %27, %28 : vector<16x32xf32>
    %cst_14 = arith.constant 0.000000e+00 : f32
    %30 = vector.broadcast %cst_14 : f32 to vector<16x32xf32>
    %31 = arith.maximumf %29, %30 : vector<16x32xf32>
    %c0_15 = arith.constant 0 : index
    %c0_16 = arith.constant 0 : index
    %32 = vector.load %arg6[%c0_15, %c0_16] : memref<32x32xf32, #tpu.memory_space<vmem>>, vector<32x32xf32>
    %c0_17 = arith.constant 0 : index
    %c0_18 = arith.constant 0 : index
    %33 = vector.load %arg7[%c0_17, %c0_18] : memref<1x32xf32, #tpu.memory_space<vmem>>, vector<1x32xf32>
    %cst_19 = arith.constant dense<0.000000e+00> : vector<16x32xf32>
    %34 = tpu.matmul %31, %32, %cst_19 {dimension_numbers = #tpu.dot_dimension_numbers<[1], [0], [0], [1], [0, 0, 1, 1], [], []>} : vector<16x32xf32>, vector<32x32xf32>, vector<16x32xf32> -> vector<16x32xf32>
    %35 = vector.broadcast %33 : vector<1x32xf32> to vector<16x32xf32>
    %36 = arith.addf %34, %35 : vector<16x32xf32>
    %c0_20 = arith.constant 0 : index
    %c0_21 = arith.constant 0 : index
    %37 = vector.load %arg8[%c0_20, %c0_21] : memref<1x32xf32, #tpu.memory_space<vmem>>, vector<1x32xf32>
    %c0_22 = arith.constant 0 : index
    %c0_23 = arith.constant 0 : index
    %38 = vector.load %arg9[%c0_22, %c0_23] : memref<1x32xf32, #tpu.memory_space<vmem>>, vector<1x32xf32>
    %cst_24 = arith.constant dense<0.000000e+00> : vector<16xf32>
    %39 = vector.multi_reduction <add>, %36, %cst_24 [1] : vector<16x32xf32> to vector<16xf32>
    %40 = vector.shape_cast %39 : vector<16xf32> to vector<16x1xf32>
    %cst_25 = arith.constant 3.200000e+01 : f32
    %41 = vector.broadcast %cst_25 : f32 to vector<16x1xf32>
    %42 = arith.divf %40, %41 : vector<16x1xf32>
    %43 = vector.broadcast %42 : vector<16x1xf32> to vector<16x32xf32>
    %44 = arith.subf %36, %43 : vector<16x32xf32>
    %45 = arith.mulf %44, %44 : vector<16x32xf32>
    %cst_26 = arith.constant dense<0.000000e+00> : vector<16xf32>
    %46 = vector.multi_reduction <add>, %45, %cst_26 [1] : vector<16x32xf32> to vector<16xf32>
    %47 = vector.shape_cast %46 : vector<16xf32> to vector<16x1xf32>
    %cst_27 = arith.constant 3.200000e+01 : f32
    %48 = vector.broadcast %cst_27 : f32 to vector<16x1xf32>
    %49 = arith.divf %47, %48 : vector<16x1xf32>
    %50 = vector.broadcast %42 : vector<16x1xf32> to vector<16x32xf32>
    %51 = arith.subf %36, %50 : vector<16x32xf32>
    %cst_28 = arith.constant 9.99999974E-6 : f32
    %52 = vector.broadcast %cst_28 : f32 to vector<16x1xf32>
    %53 = arith.addf %49, %52 : vector<16x1xf32>
    %54 = math.rsqrt %53 : vector<16x1xf32>
    %55 = vector.broadcast %54 : vector<16x1xf32> to vector<16x32xf32>
    %56 = arith.mulf %51, %55 : vector<16x32xf32>
    %57 = vector.broadcast %37 : vector<1x32xf32> to vector<16x32xf32>
    %58 = arith.mulf %56, %57 : vector<16x32xf32>
    %59 = vector.broadcast %38 : vector<1x32xf32> to vector<16x32xf32>
    %60 = arith.addf %58, %59 : vector<16x32xf32>
    %cst_29 = arith.constant 0.000000e+00 : f32
    %61 = vector.broadcast %cst_29 : f32 to vector<16x32xf32>
    %62 = arith.maximumf %60, %61 : vector<16x32xf32>
    %c0_30 = arith.constant 0 : index
    %c0_31 = arith.constant 0 : index
    %63 = vector.load %arg10[%c0_30, %c0_31] : memref<32x128xf32, #tpu.memory_space<vmem>>, vector<32x128xf32>
    %c0_32 = arith.constant 0 : index
    %c0_33 = arith.constant 0 : index
    %64 = vector.load %arg11[%c0_32, %c0_33] : memref<1x128xf32, #tpu.memory_space<vmem>>, vector<1x128xf32>
    %cst_34 = arith.constant dense<0.000000e+00> : vector<16x128xf32>
    %65 = tpu.matmul %62, %63, %cst_34 {dimension_numbers = #tpu.dot_dimension_numbers<[1], [0], [0], [1], [0, 0, 1, 1], [], []>} : vector<16x32xf32>, vector<32x128xf32>, vector<16x128xf32> -> vector<16x128xf32>
    %66 = vector.broadcast %64 : vector<1x128xf32> to vector<16x128xf32>
    %67 = arith.addf %65, %66 : vector<16x128xf32>
    %cst_35 = arith.constant 0.000000e+00 : f32
    %68 = vector.broadcast %cst_35 : f32 to vector<16x128xf32>
    %69 = arith.subf %68, %67 : vector<16x128xf32>
    %70 = math.exp %69 : vector<16x128xf32>
    %cst_36 = arith.constant 1.000000e+00 : f32
    %71 = vector.broadcast %cst_36 : f32 to vector<16x128xf32>
    %72 = arith.addf %71, %70 : vector<16x128xf32>
    %cst_37 = arith.constant 1.000000e+00 : f32
    %73 = vector.broadcast %cst_37 : f32 to vector<16x128xf32>
    %74 = arith.divf %73, %72 : vector<16x128xf32>
    %c0_38 = arith.constant 0 : index
    %c0_39 = arith.constant 0 : index
    %75 = vector.load %arg20[%c0_38, %c0_39] : memref<16x384xf32, #tpu.memory_space<vmem>>, vector<16x128xf32>
    tpu.vector_store %arg20[%c0_38, %c0_39], %74 {strides = array<i32>} : memref<16x384xf32, #tpu.memory_space<vmem>>, vector<16x128xf32>,
    %c0_40 = arith.constant 0 : index
    %c0_41 = arith.constant 0 : index
    %76 = vector.load %arg12[%c0_40, %c0_41] : memref<32x32xf32, #tpu.memory_space<vmem>>, vector<32x32xf32>
    %c0_42 = arith.constant 0 : index
    %c0_43 = arith.constant 0 : index
    %77 = vector.load %arg13[%c0_42, %c0_43] : memref<1x32xf32, #tpu.memory_space<vmem>>, vector<1x32xf32>
    %cst_44 = arith.constant dense<0.000000e+00> : vector<16x32xf32>
    %78 = tpu.matmul %31, %76, %cst_44 {dimension_numbers = #tpu.dot_dimension_numbers<[1], [0], [0], [1], [0, 0, 1, 1], [], []>} : vector<16x32xf32>, vector<32x32xf32>, vector<16x32xf32> -> vector<16x32xf32>
    %79 = vector.broadcast %77 : vector<1x32xf32> to vector<16x32xf32>
    %80 = arith.addf %78, %79 : vector<16x32xf32>
    %c0_45 = arith.constant 0 : index
    %c0_46 = arith.constant 0 : index
    %81 = vector.load %arg14[%c0_45, %c0_46] : memref<1x32xf32, #tpu.memory_space<vmem>>, vector<1x32xf32>
    %c0_47 = arith.constant 0 : index
    %c0_48 = arith.constant 0 : index
    %82 = vector.load %arg15[%c0_47, %c0_48] : memref<1x32xf32, #tpu.memory_space<vmem>>, vector<1x32xf32>
    %cst_49 = arith.constant dense<0.000000e+00> : vector<16xf32>
    %83 = vector.multi_reduction <add>, %80, %cst_49 [1] : vector<16x32xf32> to vector<16xf32>
    %84 = vector.shape_cast %83 : vector<16xf32> to vector<16x1xf32>
    %cst_50 = arith.constant 3.200000e+01 : f32
    %85 = vector.broadcast %cst_50 : f32 to vector<16x1xf32>
    %86 = arith.divf %84, %85 : vector<16x1xf32>
    %87 = vector.broadcast %86 : vector<16x1xf32> to vector<16x32xf32>
    %88 = arith.subf %80, %87 : vector<16x32xf32>
    %89 = arith.mulf %88, %88 : vector<16x32xf32>
    %cst_51 = arith.constant dense<0.000000e+00> : vector<16xf32>
    %90 = vector.multi_reduction <add>, %89, %cst_51 [1] : vector<16x32xf32> to vector<16xf32>
    %91 = vector.shape_cast %90 : vector<16xf32> to vector<16x1xf32>
    %cst_52 = arith.constant 3.200000e+01 : f32
    %92 = vector.broadcast %cst_52 : f32 to vector<16x1xf32>
    %93 = arith.divf %91, %92 : vector<16x1xf32>
    %94 = vector.broadcast %86 : vector<16x1xf32> to vector<16x32xf32>
    %95 = arith.subf %80, %94 : vector<16x32xf32>
    %cst_53 = arith.constant 9.99999974E-6 : f32
    %96 = vector.broadcast %cst_53 : f32 to vector<16x1xf32>
    %97 = arith.addf %93, %96 : vector<16x1xf32>
    %98 = math.rsqrt %97 : vector<16x1xf32>
    %99 = vector.broadcast %98 : vector<16x1xf32> to vector<16x32xf32>
    %100 = arith.mulf %95, %99 : vector<16x32xf32>
    %101 = vector.broadcast %81 : vector<1x32xf32> to vector<16x32xf32>
    %102 = arith.mulf %100, %101 : vector<16x32xf32>
    %103 = vector.broadcast %82 : vector<1x32xf32> to vector<16x32xf32>
    %104 = arith.addf %102, %103 : vector<16x32xf32>
    %cst_54 = arith.constant 0.000000e+00 : f32
    %105 = vector.broadcast %cst_54 : f32 to vector<16x32xf32>
    %106 = arith.maximumf %104, %105 : vector<16x32xf32>
    %c0_55 = arith.constant 0 : index
    %c0_56 = arith.constant 0 : index
    %107 = vector.load %arg16[%c0_55, %c0_56] : memref<32x128xf32, #tpu.memory_space<vmem>>, vector<32x128xf32>
    %c0_57 = arith.constant 0 : index
    %c0_58 = arith.constant 0 : index
    %108 = vector.load %arg17[%c0_57, %c0_58] : memref<1x128xf32, #tpu.memory_space<vmem>>, vector<1x128xf32>
    %cst_59 = arith.constant dense<0.000000e+00> : vector<16x128xf32>
    %109 = tpu.matmul %106, %107, %cst_59 {dimension_numbers = #tpu.dot_dimension_numbers<[1], [0], [0], [1], [0, 0, 1, 1], [], []>} : vector<16x32xf32>, vector<32x128xf32>, vector<16x128xf32> -> vector<16x128xf32>
    %110 = vector.broadcast %108 : vector<1x128xf32> to vector<16x128xf32>
    %111 = arith.addf %109, %110 : vector<16x128xf32>
    %c0_60 = arith.constant 0 : index
    %c128 = arith.constant 128 : index
    %112 = vector.load %arg20[%c0_60, %c128] : memref<16x384xf32, #tpu.memory_space<vmem>>, vector<16x128xf32>
    tpu.vector_store %arg20[%c0_60, %c128], %111 {strides = array<i32>} : memref<16x384xf32, #tpu.memory_space<vmem>>, vector<16x128xf32>,
    %c0_61 = arith.constant 0 : index
    %c0_62 = arith.constant 0 : index
    %113 = vector.load %arg18[%c0_61, %c0_62] : memref<32x128xf32, #tpu.memory_space<vmem>>, vector<32x128xf32>
    %c0_63 = arith.constant 0 : index
    %c0_64 = arith.constant 0 : index
    %114 = vector.load %arg19[%c0_63, %c0_64] : memref<1x128xf32, #tpu.memory_space<vmem>>, vector<1x128xf32>
    %cst_65 = arith.constant dense<0.000000e+00> : vector<16x128xf32>
    %115 = tpu.matmul %31, %113, %cst_65 {dimension_numbers = #tpu.dot_dimension_numbers<[1], [0], [0], [1], [0, 0, 1, 1], [], []>} : vector<16x32xf32>, vector<32x128xf32>, vector<16x128xf32> -> vector<16x128xf32>
    %116 = vector.broadcast %114 : vector<1x128xf32> to vector<16x128xf32>
    %117 = arith.addf %115, %116 : vector<16x128xf32>
    %cst_66 = arith.constant 0.000000e+00 : f32
    %118 = vector.broadcast %cst_66 : f32 to vector<16x128xf32>
    %119 = arith.subf %118, %117 : vector<16x128xf32>
    %120 = math.exp %119 : vector<16x128xf32>
    %cst_67 = arith.constant 1.000000e+00 : f32
    %121 = vector.broadcast %cst_67 : f32 to vector<16x128xf32>
    %122 = arith.addf %121, %120 : vector<16x128xf32>
    %cst_68 = arith.constant 1.000000e+00 : f32
    %123 = vector.broadcast %cst_68 : f32 to vector<16x128xf32>
    %124 = arith.divf %123, %122 : vector<16x128xf32>
    %c0_69 = arith.constant 0 : index
    %c256 = arith.constant 256 : index
    %125 = vector.load %arg20[%c0_69, %c256] : memref<16x384xf32, #tpu.memory_space<vmem>>, vector<16x128xf32>
    tpu.vector_store %arg20[%c0_69, %c256], %124 {strides = array<i32>} : memref<16x384xf32, #tpu.memory_space<vmem>>, vector<16x128xf32>,
    return
  }
  func.func @transform_0(%arg0: i32) -> (i32, i32) {
    %c0_i32 = arith.constant 0 : i32
    %c0_i32_0 = arith.constant 0 : i32
    return %arg0, %c0_i32 : i32, i32
  }
  func.func @transform_1(%arg0: i32) -> (i32, i32) {
    %c0_i32 = arith.constant 0 : i32
    %c0_i32_0 = arith.constant 0 : i32
    %c0_i32_1 = arith.constant 0 : i32
    return %c0_i32, %c0_i32_0 : i32, i32
  }
  func.func @transform_2(%arg0: i32) -> (i32, i32) {
    %c0_i32 = arith.constant 0 : i32
    %c0_i32_0 = arith.constant 0 : i32
    %c0_i32_1 = arith.constant 0 : i32
    return %c0_i32, %c0_i32_0 : i32, i32
  }
  func.func @transform_3(%arg0: i32) -> (i32, i32) {
    %c0_i32 = arith.constant 0 : i32
    %c0_i32_0 = arith.constant 0 : i32
    %c0_i32_1 = arith.constant 0 : i32
    return %c0_i32, %c0_i32_0 : i32, i32
  }
  func.func @transform_4(%arg0: i32) -> (i32, i32) {
    %c0_i32 = arith.constant 0 : i32
    %c0_i32_0 = arith.constant 0 : i32
    %c0_i32_1 = arith.constant 0 : i32
    return %c0_i32, %c0_i32_0 : i32, i32
  }
  func.func @transform_5(%arg0: i32) -> (i32, i32) {
    %c0_i32 = arith.constant 0 : i32
    %c0_i32_0 = arith.constant 0 : i32
    %c0_i32_1 = arith.constant 0 : i32
    return %c0_i32, %c0_i32_0 : i32, i32
  }
  func.func @transform_6(%arg0: i32) -> (i32, i32) {
    %c0_i32 = arith.constant 0 : i32
    %c0_i32_0 = arith.constant 0 : i32
    %c0_i32_1 = arith.constant 0 : i32
    return %c0_i32, %c0_i32_0 : i32, i32
  }
  func.func @transform_7(%arg0: i32) -> (i32, i32) {
    %c0_i32 = arith.constant 0 : i32
    %c0_i32_0 = arith.constant 0 : i32
    %c0_i32_1 = arith.constant 0 : i32
    return %c0_i32, %c0_i32_0 : i32, i32
  }
  func.func @transform_8(%arg0: i32) -> (i32, i32) {
    %c0_i32 = arith.constant 0 : i32
    %c0_i32_0 = arith.constant 0 : i32
    %c0_i32_1 = arith.constant 0 : i32
    return %c0_i32, %c0_i32_0 : i32, i32
  }
  func.func @transform_9(%arg0: i32) -> (i32, i32) {
    %c0_i32 = arith.constant 0 : i32
    %c0_i32_0 = arith.constant 0 : i32
    %c0_i32_1 = arith.constant 0 : i32
    return %c0_i32, %c0_i32_0 : i32, i32
  }
  func.func @transform_10(%arg0: i32) -> (i32, i32) {
    %c0_i32 = arith.constant 0 : i32
    %c0_i32_0 = arith.constant 0 : i32
    %c0_i32_1 = arith.constant 0 : i32
    return %c0_i32, %c0_i32_0 : i32, i32
  }
  func.func @transform_11(%arg0: i32) -> (i32, i32) {
    %c0_i32 = arith.constant 0 : i32
    %c0_i32_0 = arith.constant 0 : i32
    %c0_i32_1 = arith.constant 0 : i32
    return %c0_i32, %c0_i32_0 : i32, i32
  }
  func.func @transform_12(%arg0: i32) -> (i32, i32) {
    %c0_i32 = arith.constant 0 : i32
    %c0_i32_0 = arith.constant 0 : i32
    %c0_i32_1 = arith.constant 0 : i32
    return %c0_i32, %c0_i32_0 : i32, i32
  }
  func.func @transform_13(%arg0: i32) -> (i32, i32) {
    %c0_i32 = arith.constant 0 : i32
    %c0_i32_0 = arith.constant 0 : i32
    %c0_i32_1 = arith.constant 0 : i32
    return %c0_i32, %c0_i32_0 : i32, i32
  }
  func.func @transform_14(%arg0: i32) -> (i32, i32) {
    %c0_i32 = arith.constant 0 : i32
    %c0_i32_0 = arith.constant 0 : i32
    %c0_i32_1 = arith.constant 0 : i32
    return %c0_i32, %c0_i32_0 : i32, i32
  }
  func.func @transform_15(%arg0: i32) -> (i32, i32) {
    %c0_i32 = arith.constant 0 : i32
    %c0_i32_0 = arith.constant 0 : i32
    %c0_i32_1 = arith.constant 0 : i32
    return %c0_i32, %c0_i32_0 : i32, i32
  }
  func.func @transform_16(%arg0: i32) -> (i32, i32) {
    %c0_i32 = arith.constant 0 : i32
    %c0_i32_0 = arith.constant 0 : i32
    %c0_i32_1 = arith.constant 0 : i32
    return %c0_i32, %c0_i32_0 : i32, i32
  }
  func.func @transform_17(%arg0: i32) -> (i32, i32) {
    %c0_i32 = arith.constant 0 : i32
    %c0_i32_0 = arith.constant 0 : i32
    %c0_i32_1 = arith.constant 0 : i32
    return %c0_i32, %c0_i32_0 : i32, i32
  }
  func.func @transform_18(%arg0: i32) -> (i32, i32) {
    %c0_i32 = arith.constant 0 : i32
    %c0_i32_0 = arith.constant 0 : i32
    %c0_i32_1 = arith.constant 0 : i32
    return %c0_i32, %c0_i32_0 : i32, i32
  }
  func.func @transform_19(%arg0: i32) -> (i32, i32) {
    %c0_i32 = arith.constant 0 : i32
    %c0_i32_0 = arith.constant 0 : i32
    return %arg0, %c0_i32 : i32, i32
  }
}

</mosaic_0001>

<bundles_post_ra>
// kernel: tpu_custom_call.1
= control target key start
LH: loop header
LB: loop body
LE: loop exit
PB: predicated region body
PF: predicated region fallthrough
CT: control target
= control target key end

     0   :  { %s1203_s0 = inlined_call_operand.hbm [shape: f32[16,32], index: 0, kind: input, shape index: {}]   ;;  %s1204_s1 = inlined_call_operand.hbm [shape: f32[32,32], index: 1, kind: input, shape index: {}]   ;;  %s1205_s2 = inlined_call_operand.vmem [shape: f32[1,32], index: 2, kind: input, shape index: {}]   ;;  %s1206_s3 = inlined_call_operand.vmem [shape: f32[1,32], index: 3, kind: input, shape index: {}]   ;;  %s1207_s4 = inlined_call_operand.vmem [shape: f32[1,32], index: 4, kind: input, shape index: {}]   ;;  %s1208_s5 = inlined_call_operand.hbm [shape: f32[32,32], index: 5, kind: input, shape index: {}]   ;;  %s1209_s6 = inlined_call_operand.vmem [shape: f32[1,32], index: 6, kind: input, shape index: {}]   ;;  %s1210_s7 = inlined_call_operand.vmem [shape: f32[1,32], index: 7, kind: input, shape index: {}]   ;;  %s1211_s8 = inlined_call_operand.vmem [shape: f32[1,32], index: 8, kind: input, shape index: {}]   ;;  %s1212_s9 = inlined_call_operand.hbm [shape: f32[32,128], index: 9, kind: input, shape index: {}]   ;;  %s1213_s10 = inlined_call_operand.vmem [shape: f32[1,128], index: 10, kind: input, shape index: {}]   ;;  %s1214_s11 = inlined_call_operand.hbm [shape: f32[32,32], index: 11, kind: input, shape index: {}]   ;;  %s1215_s12 = inlined_call_operand.vmem [shape: f32[1,32], index: 12, kind: input, shape index: {}]   ;;  %s1216_s13 = inlined_call_operand.vmem [shape: f32[1,32], index: 13, kind: input, shape index: {}]   ;;  %s1217_s14 = inlined_call_operand.vmem [shape: f32[1,32], index: 14, kind: input, shape index: {}]   ;;  %s1218_s15 = inlined_call_operand.hbm [shape: f32[32,128], index: 15, kind: input, shape index: {}]   ;;  %s1219_s16 = inlined_call_operand.vmem [shape: f32[1,128], index: 16, kind: input, shape index: {}]   ;;  %s1220_s17 = inlined_call_operand.hbm [shape: f32[32,128], index: 17, kind: input, shape index: {}]   ;;  %s1221_s18 = inlined_call_operand.vmem [shape: f32[1,128], index: 18, kind: input, shape index: {}]   ;;  %s1222_s19 = inlined_call_operand.hbm [shape: f32[16,384], index: 19, kind: output, shape index: {}]  }
   0x1   :  { %1223 = sst [smem:[#allocation20_spill]] %s1203_s0 }
   0x2   :  { %1224 = sst [smem:[#allocation21_spill]] %s1204_s1 }
   0x3   :  { %1225 = sst [smem:[#allocation22_spill]] %s1205_s2 }
   0x4   :  { %1226 = sst [smem:[#allocation23_spill]] %s1206_s3 }
   0x5   :  { %24 = vsyncpa [#allocation3], 0 }
   0x6   :  { %25 = vsyncpa [#allocation6], 0 }
   0x7   :  { %26 = vsyncpa [#allocation9], 0 }
   0x8   :  { %27 = vsyncpa [#allocation12], 0 }
   0x9   :  { %28 = vsyncpa [#allocation4], 0  ;;  %s1227_s20 = sld [smem:[#allocation21_spill]]  ;;  %s947_s1 = smov [#allocation5]  }
   0xa   :  { %s48_s22 = sshll.u32 %s947_s1, 4  ;;  %s84_s24 = sshll.u32 %s1212_s9, 4  ;;  %s49_s22 = int_to_ptr.vmem [resolvable:$true] %s48_s22  ;;  %s85_s24 = int_to_ptr.hbm [resolvable:$true] %s84_s24 }
   0xb   :  { %s948_s25 = smov 128   ;;  %s949_s3 = smov 8  }
   0xc   :  { %s950_s26 = smov [#allocation8]   ;;  %s118_s0 = sshll.u32 %s1218_s15, 4  ;;  %s119_s0 = int_to_ptr.hbm [resolvable:$true] %s118_s0 }
   0xd   :  { %s86_s27 = sshll.u32 %s950_s26, 4  ;;  %s951_s2 = smov [#allocation11]   ;;  %s87_s27 = int_to_ptr.vmem [resolvable:$true] %s86_s27 }
   0xe   :  { %92 = dma.hbm_to_vmem [thread:$0]  %s85_s24, 512, %s87_s27, [#allocation9], %s948_s25, %s948_s25, %s949_s3  }
   0xf   :  { %s46_s21 = sshll.u32 %s1227_s20, 4  ;;  %s1228_s20 = sld [smem:[#allocation20_spill]]  ;;  %s47_s21 = int_to_ptr.hbm [resolvable:$true] %s46_s21 }
  0x10   :  { %54 = dma.hbm_to_vmem [thread:$0]  %s47_s21, 512, %s49_s22, [#allocation6], %s948_s25, %s948_s25, %s949_s3  }
  0x11   :  { %s120_s23 = sshll.u32 %s951_s2, 4  ;;  %s952_s21 = smov [#allocation2]   ;;  %s121_s23 = int_to_ptr.vmem [resolvable:$true] %s120_s23 }
  0x12   :  { %126 = dma.hbm_to_vmem [thread:$0]  %s119_s0, 512, %s121_s23, [#allocation12], %s948_s25, %s948_s25, %s949_s3  }
  0x13   :  { %s35_s15 = sshll.u32 %s952_s21, 4  ;;  %s65_s28 = sshll.u32 %s1208_s5, 4  ;;  %s36_s15 = int_to_ptr.vmem [resolvable:$true] %s35_s15  ;;  %s66_s28 = int_to_ptr.hbm [resolvable:$true] %s65_s28 }
  0x14   :  { %s99_s29 = sshll.u32 %s1214_s11, 4  ;;  %s953_s9 = smov [#allocation7]   ;;  %s100_s29 = int_to_ptr.hbm [resolvable:$true] %s99_s29 }
  0x15   :  { %s33_s1 = sshll.u32 %s1228_s20, 4  ;;  %s67_s30 = sshll.u32 %s953_s9, 4  ;;  %s34_s1 = int_to_ptr.hbm [resolvable:$true] %s33_s1  ;;  %s68_s30 = int_to_ptr.vmem [resolvable:$true] %s67_s30 }
  0x16   :  { %41 = dma.hbm_to_vmem [thread:$0]  %s34_s1, 256, %s36_s15, [#allocation3], %s948_s25, %s948_s25, %s949_s3  }
  0x17   :  { %73 = dma.hbm_to_vmem [thread:$0]  %s66_s28, 512, %s68_s30, [#allocation6], %s948_s25, %s948_s25, %s949_s3  }
  0x18   :  { %s954_s0 = smov [#allocation10]   ;;  %s133_s23 = sshll.u32 %s1220_s17, 4  ;;  %s134_s23 = int_to_ptr.hbm [resolvable:$true] %s133_s23 }
  0x19   :  { %s101_s5 = sshll.u32 %s954_s0, 4  ;;  %s955_s11 = smov [#allocation13]   ;;  %s102_s5 = int_to_ptr.vmem [resolvable:$true] %s101_s5 }
  0x1a   :  { %107 = dma.hbm_to_vmem [thread:$0]  %s100_s29, 512, %s102_s5, [#allocation9], %s948_s25, %s948_s25, %s949_s3  }
  0x1b   :  { %s135_s1 = sshll.u32 %s955_s11, 4  ;;  %s136_s1 = int_to_ptr.vmem [resolvable:$true] %s135_s1 }
  0x1c   :  { %141 = dma.hbm_to_vmem [thread:$0]  %s134_s23, 512, %s136_s1, [#allocation12], %s948_s25, %s948_s25, %s949_s3  }
  0x1d   :  { %937 = dma.done.wait [#allocation3], 256  }
  0x1e   :  { %938 = vsyncadd [#allocation3], 4294967040 }
  0x1f   :  { %939 = dma.done.wait [#allocation6], 1024  }
  0x20   :  { %940 = vsyncadd [#allocation6], 4294966272 }
  0x21   :  { %941 = dma.done.wait [#allocation9], 1024  }
  0x22   :  { %942 = vsyncadd [#allocation9], 4294966272 }
  0x23   :  { %943 = dma.done.wait [#allocation12], 1024  }
  0x24   :  { %944 = vsyncadd [#allocation12], 4294966272  ;;  %v177_v0 = vld [vmem:[#allocation5 + $0x18] sm:$0xff]  ;;  %v176_v1 = vld [vmem:[#allocation5 + $0x10] sm:$0xff]  ;;  %vm184_vm0 = vcmask 261120   ;;  %s1229_s3 = sld [smem:[#allocation22_spill]] }
  0x25   :  { %203 = vmatpush.msra.mxu0 %v177_v0  ;;  %682 = vmatpush.msra.mxu2 %v177_v0  ;;  %v175_v2 = vld [vmem:[#allocation5 + $0x8] sm:$0xff]  ;;  %v174_v3 = vld [vmem:[#allocation5] sm:$0xff]  ;;  %v172_v4 = vld [vmem:[#allocation2] sm:$0xff]  ;;  %v956_v13 = vmov 32.0   ;;  %s1230_s22 = sld [smem:[#allocation23_spill]]  ;;  %s654_s17 = sshll.u32 %s1222_s19, 4  ;;  %s655_s17 = int_to_ptr.hbm [resolvable:$true] %s654_s17 }
  0x26   :  { %v173_v5 = vld [vmem:[#allocation2 + $0x8] sm:$0xff]  ;;  %715 = vrcp.f32 %v956_v13  ;;  %v279_v31 = vld [vmem:[#allocation7 + $0x10] sm:$0xff]  ;;  %v278_v32 = vld [vmem:[#allocation7 + $0x8] sm:$0xff]  ;;  %s958_s25 = smov 384  }
  0x27   :  { %204 = vmatpush.msra.mxu0 %v176_v1  ;;  %683 = vmatpush.msra.mxu2 %v176_v1  ;;  %v280_v30 = vld [vmem:[#allocation7 + $0x18] sm:$0xff]  ;;  %v277_v33 = vld [vmem:[#allocation7] sm:$0xff]  ;;  %v579_v35 = vld [vmem:[#allocation13 + $0x10] sm:$0xff] }
  0x28   :  { %303 = vmatpush.msra.mxu1 %v280_v30  ;;  %686 = vmatpush.msra.mxu3 %v280_v30  ;;  %v580_v34 = vld [vmem:[#allocation13 + $0x18] sm:$0xff]  ;;  %v578_v38 = vld [vmem:[#allocation13 + $0x8] sm:$0xff]  ;;  %v577_v40 = vld [vmem:[#allocation13] sm:$0xff] }
  0x29   :  { %205 = vmatpush.msra.mxu0 %v175_v2  ;;  %684 = vmatpush.msra.mxu2 %v175_v2  ;;  %v452_v41 = vld [vmem:[#allocation10 + $0x18] sm:$0xff]  ;;  %v451_v42 = vld [vmem:[#allocation10 + $0x10] sm:$0xff]  ;;  %v450_v45 = vld [vmem:[#allocation10 + $0x8] sm:$0xff] }
  0x2a   :  { %v703_v6 = vld [vmem:[%s1229_s3] ss:$0 sm:$0xff]  ;;  %304 = vmatpush.msra.mxu1 %v279_v31  ;;  %687 = vmatpush.msra.mxu3 %v279_v31  ;;  %v449_v48 = vld [vmem:[#allocation10] sm:$0xff]  ;;  %s959_s3 = smov 24  }
  0x2b   :  { %206 = vmatpush.msra.mxu0 %v174_v3  ;;  %685 = vmatpush.msra.mxu2 %v174_v3  ;;  %v704_v56 = vld [vmem:[%s1230_s22] ss:$0 sm:$0xff] }
  0x2c   :  { %670 = vmatmul.msk.f32.vlgmr.msra.gmra.mxu0 %vm184_vm0, %v172_v4  ;;  %671 = vmatmul.msk.f32.vlgmr.msra.gmra.mxu2 %vm184_vm0, %v173_v5  ;;  %v716_v14 = vpop.eup %715  ;;  %v705_v60 = vld [vmem:[%s1207_s4] ss:$0 sm:$0xff] }
  0x2d   :  { %v221_v15 = vmul.f32 32.0, %v716_v14  ;;  %vm225_vm1 = vweird.f32 %v716_v14  ;;  %305 = vmatpush.msra.mxu1 %v278_v32  ;;  %688 = vmatpush.msra.mxu3 %v278_v32 }
  0x2f   :  { %v222_v16 = vsub.f32 1.0, %v221_v15  ;;  %306 = vmatpush.msra.mxu1 %v277_v33  ;;  %689 = vmatpush.msra.mxu3 %v277_v33 }
  0x31   :  { %v223_v17 = vmul.f32 %v716_v14, %v222_v16  ;;  %597 = vmatpush.msrb.mxu1 %v580_v34  ;;  %469 = vmatpush.msrb.mxu3 %v452_v41 }
  0x33   :  { %v224_v18 = vadd.f32 %v716_v14, %v223_v17  ;;  %598 = vmatpush.msrb.mxu1 %v579_v35  ;;  %470 = vmatpush.msrb.mxu3 %v451_v42 }
  0x35   :  { %v1109_v19 = vsel %vm225_vm1, %v716_v14, %v224_v18  ;;  %599 = vmatpush.msrb.mxu1 %v578_v38  ;;  %471 = vmatpush.msrb.mxu3 %v450_v45 }
  0x37   :  { %600 = vmatpush.msrb.mxu1 %v577_v40  ;;  %472 = vmatpush.msrb.mxu3 %v449_v48 }
  0xa9   :  { %v208_v7 = vpop.f32.mrf.mxu0 }
  0xaa   :  { %v209_v8 = vadd.f32 %v703_v6, %v208_v7 }
  0xac   :  { %v214_v9 = vsel %vm184_vm0, %v209_v8, 0.0 }
  0xad   :  { %215 = vadd.xlane.f32.xlu0 %v214_v9 }
  0xaf   :  { %v211_v10 = vpop.f32.mrf.mxu2 }
  0xb0   :  { %v212_v11 = vadd.f32 %v703_v6, %v211_v10 }
  0xb2   :  { %v217_v12 = vsel %vm184_vm0, %v212_v11, 0.0 }
  0xb5   :  { %218 = vadd.xlane.f32.xlu0 %v217_v12  ;;  %v707_v12 = vld [vmem:[%s1221_s18] ss:$0 sm:$0xff] }
 0x120   :  { %v216_v20 = vpop.xlane.xlu0 %215 }
 0x121   :  { %v227_v21 = vmul.f32 %v1109_v19, %v216_v20 }
 0x123   :  { %v229_v22 = vsub.f32 %v209_v8, %v227_v21  ;;  %v706_v8 = vld [vmem:[%s1209_s6] ss:$0 sm:$0xff] }
 0x125   :  { %v231_v23 = vmul.f32 %v229_v22, %v229_v22 }
 0x127   :  { %v233_v24 = vsel %vm184_vm0, %v231_v23, 0.0 }
 0x128   :  { %234 = vadd.xlane.f32.xlu1 %v233_v24  ;;  %v219_v25 = vpop.xlane.xlu0 %218  ;;  %v708_v24 = vld [vmem:[%s1215_s12] ss:$0 sm:$0xff] }
 0x129   :  { %v228_v26 = vmul.f32 %v1109_v19, %v219_v25 }
 0x12b   :  { %v1114_v27 = vsub.f32 %v212_v11, %v228_v26 }
 0x12d   :  { %v232_v28 = vmul.f32 %v1114_v27, %v1114_v27 }
 0x12f   :  { %v236_v29 = vsel %vm184_vm0, %v232_v28, 0.0 }
 0x130   :  { %237 = vadd.xlane.f32.xlu1 %v236_v29 }
 0x19b   :  { %v235_v36 = vpop.xlane.xlu1 %234 }
 0x19c   :  { %v239_v37 = vmul.f32 %v235_v36, %v1109_v19 }
 0x19e   :  { %v241_v39 = vadd.f32 1e-05, %v239_v37 }
 0x1a0   :  { %717 = vrsqrt.f32 %v241_v39  ;;  %vm249_vm3 = vweird.f32 %v241_v39 }
 0x1a3   :  { %v238_v43 = vpop.xlane.xlu1 %237 }
 0x1a4   :  { %v240_v44 = vmul.f32 %v238_v43, %v1109_v19 }
 0x1a6   :  { %v718_v46 = vpop.eup %717  ;;  %v242_v47 = vadd.f32 1e-05, %v240_v44 }
 0x1a7   :  { %v244_v49 = vmul.f32 %v718_v46, %v241_v39  ;;  %vm250_vm2 = vweird.f32 %v718_v46 }
 0x1a8   :  { %719 = vrsqrt.f32 %v242_v47  ;;  %vm251_vm4 = vmor %vm249_vm3, %vm250_vm2  ;;  %vm259_vm6 = vweird.f32 %v242_v47 }
 0x1a9   :  { %v245_v50 = vmul.f32 %v718_v46, %v244_v49 }
 0x1ab   :  { %v246_v51 = vmul.f32 0.5, %v245_v50 }
 0x1ad   :  { %v247_v52 = vsub.f32 1.5, %v246_v51 }
 0x1ae   :  { %v720_v53 = vpop.eup %719 }
 0x1af   :  { %v248_v54 = vmul.f32 %v718_v46, %v247_v52  ;;  %v254_v55 = vmul.f32 %v720_v53, %v242_v47  ;;  %vm260_vm5 = vweird.f32 %v720_v53 }
 0x1b0   :  { %vm261_vm7 = vmor %vm259_vm6, %vm260_vm5 }
 0x1b1   :  { %v252_v57 = vsel %vm251_vm4, %v718_v46, %v248_v54  ;;  %v255_v58 = vmul.f32 %v720_v53, %v254_v55 }
 0x1b2   :  { %v263_v59 = vmul.f32 %v252_v57, %v229_v22 }
 0x1b3   :  { %v256_v61 = vmul.f32 0.5, %v255_v58 }
 0x1b4   :  { %v268_v62 = vmul.f32 %v704_v56, %v263_v59 }
 0x1b5   :  { %v257_v63 = vsub.f32 1.5, %v256_v61 }
 0x1b6   :  { %v273_v0 = vadd.f32 %v705_v60, %v268_v62 }
 0x1b7   :  { %v258_v1 = vmul.f32 %v720_v53, %v257_v63 }
 0x1b8   :  { %v275_v2 = vmax.f32 %v273_v0, 0.0 }
 0x1b9   :  { %v262_v3 = vsel %vm261_vm7, %v720_v53, %v258_v1 }
 0x1ba   :  { %672 = vmatmul.msk.f32.vlgmr.msra.gmra.mxu1 %vm184_vm0, %v275_v2  ;;  %v264_v4 = vmul.f32 %v262_v3, %v1114_v27 }
 0x1bc   :  { %v269_v5 = vmul.f32 %v704_v56, %v264_v4 }
 0x1be   :  { %v274_v6 = vadd.f32 %v705_v60, %v269_v5 }
 0x1c0   :  { %v276_v7 = vmax.f32 %v274_v6, 0.0 }
 0x1c2   :  { %673 = vmatmul.msk.f32.vlgmr.msra.gmra.mxu3 %vm184_vm0, %v276_v7  ;;  %680 = vmatmul.msk.f32.vlgmr.msrb.gmra.mxu1 %vm184_vm0, %v275_v2 }
 0x1ca   :  { %676 = vmatmul.msk.f32.vlgmr.msrb.gmra.mxu3 %vm184_vm0, %v275_v2  ;;  %681 = vmatmul.msk.f32.gmra.mxu1 %vm184_vm0, %v276_v7 }
 0x1d2   :  { %677 = vmatmul.msk.f32.gmra.mxu3 %vm184_vm0, %v276_v7 }
 0x237   :  { %v308_v9 = vpop.f32.mrf.mxu1 }
 0x238   :  { %v1137_v10 = vadd.f32 %v706_v8, %v308_v9 }
 0x23a   :  { %v316_v11 = vsel %vm184_vm0, %v1137_v10, 0.0 }
 0x23b   :  { %317 = vadd.xlane.f32.xlu2 %v316_v11 }
 0x23f   :  { %v602_v13 = vpop.f32.mrf.mxu1 }
 0x240   :  { %v603_v14 = vadd.f32 %v707_v12, %v602_v13  ;;  %v374_v13 = vld [vmem:[#allocation8 + $0x10] sm:$0xff] }
 0x242   :  { %v608_v15 = vsub.f32 0.0, %v603_v14  ;;  %v373_v14 = vld [vmem:[#allocation8 + $0x8] sm:$0xff] }
 0x244   :  { %v610_v16 = vmul.f32 1.442695, %v608_v15  ;;  %v372_v15 = vld [vmem:[#allocation8] sm:$0xff] }
 0x245   :  { %v311_v17 = vpop.f32.mrf.mxu3 }
 0x246   :  { %721 = vpow2.f32 %v610_v16  ;;  %v312_v18 = vadd.f32 %v706_v8, %v311_v17 }
 0x247   :  { %v605_v20 = vpop.f32.mrf.mxu1 }
 0x248   :  { %v606_v21 = vadd.f32 %v707_v12, %v605_v20  ;;  %v319_v22 = vsel %vm184_vm0, %v312_v18, 0.0  ;;  %v375_v12 = vld [vmem:[#allocation8 + $0x18] sm:$0xff] }
 0x249   :  { %320 = vadd.xlane.f32.xlu2 %v319_v22  ;;  %398 = vmatpush.msrb.mxu2 %v375_v12  ;;  %v541_v22 = vld [vmem:[#allocation11 + $0x18] sm:$0xff] }
 0x24a   :  { %v609_v23 = vsub.f32 0.0, %v606_v21  ;;  %564 = vmatpush.msrb.mxu0 %v541_v22 }
 0x24b   :  { %399 = vmatpush.msrb.mxu2 %v374_v13 }
 0x24c   :  { %v722_v25 = vpop.eup %721  ;;  %v612_v26 = vmul.f32 1.442695, %v609_v23 }
 0x24d   :  { %v614_v27 = vadd.f32 1.0, %v722_v25  ;;  %v474_v28 = vpop.f32.mrf.mxu3  ;;  %400 = vmatpush.msrb.mxu2 %v373_v14 }
 0x24e   :  { %723 = vpow2.f32 %v612_v26  ;;  %v475_v29 = vadd.f32 %v708_v24, %v474_v28  ;;  %v540_v26 = vld [vmem:[#allocation11 + $0x10] sm:$0xff] }
 0x24f   :  { %725 = vrcp.f32 %v614_v27  ;;  %v627_v39 = vand.u32 2147483648, %v614_v27  ;;  %v625_v41 = vand.u32 2147483647, %v614_v27  ;;  %vm621_vm9 = vweird.f32 %v614_v27  ;;  %401 = vmatpush.msrb.mxu2 %v372_v15  ;;  %565 = vmatpush.msrb.mxu0 %v540_v26 }
 0x250   :  { %v482_v30 = vsel %vm184_vm0, %v475_v29, 0.0 }
 0x251   :  { %483 = vadd.xlane.f32.xlu0 %v482_v30  ;;  %v628_v44 = vor.u32 1.1754944e-38, %v627_v39  ;;  %vm626_vm11 = vcmp.eq.f32.partialorder %v625_v41, 8.507059e+37 }
 0x254   :  { %v724_v31 = vpop.eup %723 }
 0x255   :  { %v726_v32 = vpop.eup %725  ;;  %v615_v33 = vadd.f32 1.0, %v724_v31  ;;  %v477_v34 = vpop.f32.mrf.mxu3  ;;  %v538_v31 = vld [vmem:[#allocation11] sm:$0xff] }
 0x256   :  { %v617_v35 = vmul.f32 %v726_v32, %v614_v27  ;;  %v478_v36 = vadd.f32 %v708_v24, %v477_v34  ;;  %vm622_vm8 = vweird.f32 %v726_v32 }
 0x257   :  { %727 = vrcp.f32 %v615_v33  ;;  %vm623_vm10 = vmor %vm621_vm9, %vm622_vm8  ;;  %v642_v49 = vand.u32 2147483648, %v615_v33  ;;  %v640_v51 = vand.u32 2147483647, %v615_v33  ;;  %vm636_vm13 = vweird.f32 %v615_v33 }
 0x258   :  { %v618_v37 = vsub.f32 1.0, %v617_v35  ;;  %v485_v38 = vsel %vm184_vm0, %v478_v36, 0.0 }
 0x259   :  { %486 = vadd.xlane.f32.xlu1 %v485_v38  ;;  %v643_v53 = vor.u32 1.1754944e-38, %v642_v49  ;;  %vm641_vm15 = vcmp.eq.f32.partialorder %v640_v51, 8.507059e+37  ;;  %v710_v38 = vld [vmem:[%s1211_s8] ss:$0 sm:$0xff] }
 0x25a   :  { %v619_v40 = vmul.f32 %v726_v32, %v618_v37 }
 0x25c   :  { %v620_v42 = vadd.f32 %v726_v32, %v619_v40 }
 0x25d   :  { %v728_v43 = vpop.eup %727 }
 0x25e   :  { %v624_v45 = vsel %vm623_vm10, %v726_v32, %v620_v42  ;;  %v632_v46 = vmul.f32 %v728_v43, %v615_v33  ;;  %vm637_vm12 = vweird.f32 %v728_v43  ;;  %v709_v33 = vld [vmem:[%s1210_s7] ss:$0 sm:$0xff] }
 0x25f   :  { %v629_v47 = vsel %vm626_vm11, %v628_v44, %v624_v45  ;;  %vm638_vm14 = vmor %vm636_vm13, %vm637_vm12 }
 0x260   :  { %646 = vst [vmem:[#allocation14 + $0x10] sm:$0xff] %v629_v47  ;;  %v633_v48 = vsub.f32 1.0, %v632_v46 }
 0x262   :  { %v634_v50 = vmul.f32 %v728_v43, %v633_v48 }
 0x264   :  { %v635_v52 = vadd.f32 %v728_v43, %v634_v50 }
 0x266   :  { %v639_v54 = vsel %vm638_vm14, %v728_v43, %v635_v52 }
 0x267   :  { %v644_v55 = vsel %vm641_vm15, %v643_v53, %v639_v54 }
 0x268   :  { %647 = vst [vmem:[#allocation14 + $0x28] sm:$0xff] %v644_v55 }
 0x2ae   :  { %v318_v56 = vpop.xlane.xlu2 %317 }
 0x2af   :  { %v322_v57 = vmul.f32 %v318_v56, %v1109_v19 }
 0x2b1   :  { %v324_v58 = vsub.f32 %v1137_v10, %v322_v57 }
 0x2b3   :  { %v326_v59 = vmul.f32 %v324_v58, %v324_v58 }
 0x2b5   :  { %v328_v60 = vsel %vm184_vm0, %v326_v59, 0.0 }
 0x2b6   :  { %329 = vadd.xlane.f32.xlu2 %v328_v60 }
 0x2bc   :  { %v321_v61 = vpop.xlane.xlu2 %320 }
 0x2bd   :  { %v323_v62 = vmul.f32 %v321_v61, %v1109_v19 }
 0x2bf   :  { %v1154_v63 = vsub.f32 %v312_v18, %v323_v62 }
 0x2c1   :  { %v327_v0 = vmul.f32 %v1154_v63, %v1154_v63 }
 0x2c3   :  { %v331_v1 = vsel %vm184_vm0, %v327_v0, 0.0 }
 0x2c4   :  { %v484_v2 = vpop.xlane.xlu0 %483  ;;  %332 = vadd.xlane.f32.xlu0 %v331_v1  ;;  %v711_v1 = vld [vmem:[%s1216_s13] ss:$0 sm:$0xff] }
 0x2c5   :  { %v488_v3 = vmul.f32 %v484_v2, %v1109_v19 }
 0x2c7   :  { %v1160_v4 = vsub.f32 %v475_v29, %v488_v3  ;;  %v539_v29 = vld [vmem:[#allocation11 + $0x8] sm:$0xff] }
 0x2c8   :  { %566 = vmatpush.msrb.mxu0 %v539_v29 }
 0x2c9   :  { %v492_v5 = vmul.f32 %v1160_v4, %v1160_v4 }
 0x2ca   :  { %567 = vmatpush.msrb.mxu0 %v538_v31 }
 0x2cb   :  { %v494_v6 = vsel %vm184_vm0, %v492_v5, 0.0 }
 0x2cc   :  { %v487_v7 = vpop.xlane.xlu1 %486  ;;  %495 = vadd.xlane.f32.xlu1 %v494_v6 }
 0x2cd   :  { %v489_v8 = vmul.f32 %v487_v7, %v1109_v19 }
 0x2cf   :  { %v1166_v9 = vsub.f32 %v478_v36, %v489_v8 }
 0x2d1   :  { %v493_v10 = vmul.f32 %v1166_v9, %v1166_v9 }
 0x2d3   :  { %v497_v11 = vsel %vm184_vm0, %v493_v10, 0.0 }
 0x2d4   :  { %498 = vadd.xlane.f32.xlu2 %v497_v11 }
 0x329   :  { %v330_v16 = vpop.xlane.xlu2 %329 }
 0x32a   :  { %v334_v17 = vmul.f32 %v330_v16, %v1109_v19 }
 0x32c   :  { %v336_v18 = vadd.f32 1e-05, %v334_v17  ;;  %v713_v17 = vld [vmem:[%s1213_s10] ss:$0 sm:$0xff]  ;;  %s957_s10 = smov [#allocation14]  }
 0x32e   :  { %729 = vrsqrt.f32 %v336_v18  ;;  %vm344_vm2 = vweird.f32 %v336_v18 }
 0x334   :  { %v730_v20 = vpop.eup %729 }
 0x335   :  { %v339_v21 = vmul.f32 %v730_v20, %v336_v18  ;;  %vm345_vm1 = vweird.f32 %v730_v20 }
 0x336   :  { %vm346_vm3 = vmor %vm344_vm2, %vm345_vm1 }
 0x337   :  { %v340_v23 = vmul.f32 %v730_v20, %v339_v21  ;;  %v333_v24 = vpop.xlane.xlu0 %332 }
 0x338   :  { %v335_v25 = vmul.f32 %v333_v24, %v1109_v19  ;;  %v714_v24 = vld [vmem:[%s1219_s16] ss:$0 sm:$0xff]  ;;  %s652_s16 = sshll.u32 %s957_s10, 4  ;;  %s653_s16 = int_to_ptr.vmem [resolvable:$true] %s652_s16 }
 0x339   :  { %v341_v27 = vmul.f32 0.5, %v340_v23 }
 0x33a   :  { %v337_v28 = vadd.f32 1e-05, %v335_v25 }
 0x33b   :  { %v342_v30 = vsub.f32 1.5, %v341_v27 }
 0x33c   :  { %731 = vrsqrt.f32 %v337_v28  ;;  %vm354_vm5 = vweird.f32 %v337_v28 }
 0x33d   :  { %v343_v32 = vmul.f32 %v730_v20, %v342_v30 }
 0x33f   :  { %v347_v34 = vsel %vm346_vm3, %v730_v20, %v343_v32  ;;  %v496_v35 = vpop.xlane.xlu1 %495 }
 0x340   :  { %v358_v36 = vmul.f32 %v347_v34, %v324_v58  ;;  %v500_v37 = vmul.f32 %v496_v35, %v1109_v19 }
 0x342   :  { %v732_v39 = vpop.eup %731  ;;  %v502_v40 = vadd.f32 1e-05, %v500_v37  ;;  %v363_v41 = vmul.f32 %v709_v33, %v358_v36 }
 0x343   :  { %v349_v42 = vmul.f32 %v732_v39, %v337_v28  ;;  %vm355_vm4 = vweird.f32 %v732_v39 }
 0x344   :  { %733 = vrsqrt.f32 %v502_v40  ;;  %v368_v43 = vadd.f32 %v710_v38, %v363_v41  ;;  %vm356_vm6 = vmor %vm354_vm5, %vm355_vm4  ;;  %vm510_vm8 = vweird.f32 %v502_v40 }
 0x345   :  { %v350_v44 = vmul.f32 %v732_v39, %v349_v42 }
 0x346   :  { %v370_v45 = vmax.f32 %v368_v43, 0.0 }
 0x347   :  { %v351_v46 = vmul.f32 0.5, %v350_v44  ;;  %v499_v47 = vpop.xlane.xlu2 %498 }
 0x348   :  { %v501_v48 = vmul.f32 %v499_v47, %v1109_v19  ;;  %674 = vmatmul.msk.f32.vlgmr.msrb.gmra.mxu2 %vm184_vm0, %v370_v45 }
 0x349   :  { %v352_v49 = vsub.f32 1.5, %v351_v46 }
 0x34a   :  { %v734_v50 = vpop.eup %733  ;;  %v503_v51 = vadd.f32 1e-05, %v501_v48 }
 0x34b   :  { %v353_v52 = vmul.f32 %v732_v39, %v352_v49  ;;  %v505_v53 = vmul.f32 %v734_v50, %v502_v40  ;;  %vm511_vm7 = vweird.f32 %v734_v50 }
 0x34c   :  { %735 = vrsqrt.f32 %v503_v51  ;;  %vm512_vm9 = vmor %vm510_vm8, %vm511_vm7  ;;  %vm520_vm11 = vweird.f32 %v503_v51 }
 0x34d   :  { %v357_v54 = vsel %vm356_vm6, %v732_v39, %v353_v52  ;;  %v506_v55 = vmul.f32 %v734_v50, %v505_v53 }
 0x34e   :  { %v359_v56 = vmul.f32 %v357_v54, %v1154_v63  ;;  %v712_v63 = vld [vmem:[%s1217_s14] ss:$0 sm:$0xff] }
 0x34f   :  { %v507_v57 = vmul.f32 0.5, %v506_v55 }
 0x350   :  { %v364_v58 = vmul.f32 %v709_v33, %v359_v56 }
 0x351   :  { %v508_v59 = vsub.f32 1.5, %v507_v57 }
 0x352   :  { %v736_v19 = vpop.eup %735  ;;  %v369_v60 = vadd.f32 %v710_v38, %v364_v58 }
 0x353   :  { %v509_v61 = vmul.f32 %v734_v50, %v508_v59  ;;  %v515_v62 = vmul.f32 %v736_v19, %v503_v51  ;;  %vm521_vm10 = vweird.f32 %v736_v19 }
 0x354   :  { %v371_v0 = vmax.f32 %v369_v60, 0.0  ;;  %vm522_vm12 = vmor %vm520_vm11, %vm521_vm10 }
 0x355   :  { %v513_v2 = vsel %vm512_vm9, %v734_v50, %v509_v61  ;;  %v516_v3 = vmul.f32 %v736_v19, %v515_v62 }
 0x356   :  { %v524_v5 = vmul.f32 %v513_v2, %v1160_v4  ;;  %675 = vmatmul.msk.f32.gmra.mxu2 %vm184_vm0, %v371_v0 }
 0x357   :  { %v517_v6 = vmul.f32 0.5, %v516_v3 }
 0x358   :  { %v529_v7 = vmul.f32 %v711_v1, %v524_v5 }
 0x359   :  { %v518_v8 = vsub.f32 1.5, %v517_v6 }
 0x35a   :  { %v534_v10 = vadd.f32 %v712_v63, %v529_v7 }
 0x35b   :  { %v519_v11 = vmul.f32 %v736_v19, %v518_v8 }
 0x35c   :  { %v536_v12 = vmax.f32 %v534_v10, 0.0 }
 0x35d   :  { %v523_v13 = vsel %vm522_vm12, %v736_v19, %v519_v11 }
 0x35e   :  { %678 = vmatmul.msk.f32.vlgmr.msrb.gmra.mxu0 %vm184_vm0, %v536_v12  ;;  %v525_v4 = vmul.f32 %v523_v13, %v1166_v9 }
 0x360   :  { %v530_v14 = vmul.f32 %v711_v1, %v525_v4 }
 0x362   :  { %v535_v15 = vadd.f32 %v712_v63, %v530_v14 }
 0x364   :  { %v537_v16 = vmax.f32 %v535_v15, 0.0 }
 0x366   :  { %679 = vmatmul.msk.f32.gmra.mxu0 %vm184_vm0, %v537_v16 }
 0x3cb   :  { %v403_v18 = vpop.f32.mrf.mxu2 }
 0x3cc   :  { %v404_v20 = vadd.f32 %v713_v17, %v403_v18 }
 0x3ce   :  { %v409_v21 = vsub.f32 0.0, %v404_v20 }
 0x3d0   :  { %v411_v22 = vmul.f32 1.442695, %v409_v21 }
 0x3d2   :  { %737 = vpow2.f32 %v411_v22 }
 0x3d8   :  { %v738_v23 = vpop.eup %737 }
 0x3d9   :  { %v415_v9 = vadd.f32 1.0, %v738_v23  ;;  %v406_v25 = vpop.f32.mrf.mxu2 }
 0x3da   :  { %v407_v26 = vadd.f32 %v713_v17, %v406_v25 }
 0x3db   :  { %739 = vrcp.f32 %v415_v9  ;;  %v569_v27 = vpop.f32.mrf.mxu0  ;;  %v428_v36 = vand.u32 2147483648, %v415_v9  ;;  %v426_v39 = vand.u32 2147483647, %v415_v9  ;;  %vm422_vm13 = vweird.f32 %v415_v9 }
 0x3dc   :  { %v410_v28 = vsub.f32 0.0, %v407_v26  ;;  %v570_v29 = vadd.f32 %v714_v24, %v569_v27 }
 0x3dd   :  { %v429_v42 = vor.u32 1.1754944e-38, %v428_v36  ;;  %vm427_vm15 = vcmp.eq.f32.partialorder %v426_v39, 8.507059e+37 }
 0x3de   :  { %v413_v30 = vmul.f32 1.442695, %v410_v28  ;;  %575 = vst [vmem:[#allocation14 + $0x8] sm:$0xff] %v570_v29 }
 0x3e0   :  { %741 = vpow2.f32 %v413_v30 }
 0x3e1   :  { %v740_v31 = vpop.eup %739 }
 0x3e2   :  { %v418_v32 = vmul.f32 %v740_v31, %v415_v9  ;;  %vm423_vm0 = vweird.f32 %v740_v31 }
 0x3e3   :  { %v572_v33 = vpop.f32.mrf.mxu0  ;;  %vm424_vm14 = vmor %vm422_vm13, %vm423_vm0 }
 0x3e4   :  { %v419_v34 = vsub.f32 1.0, %v418_v32  ;;  %v573_v35 = vadd.f32 %v714_v24, %v572_v33 }
 0x3e6   :  { %v742_v37 = vpop.eup %741  ;;  %v420_v38 = vmul.f32 %v740_v31, %v419_v34  ;;  %576 = vst [vmem:[#allocation14 + $0x20] sm:$0xff] %v573_v35 }
 0x3e7   :  { %v416_v40 = vadd.f32 1.0, %v742_v37 }
 0x3e8   :  { %v421_v41 = vadd.f32 %v740_v31, %v420_v38 }
 0x3e9   :  { %743 = vrcp.f32 %v416_v40  ;;  %v443_v48 = vand.u32 2147483648, %v416_v40  ;;  %v441_v50 = vand.u32 2147483647, %v416_v40  ;;  %vm437_vm2 = vweird.f32 %v416_v40 }
 0x3ea   :  { %v425_v43 = vsel %vm424_vm14, %v740_v31, %v421_v41 }
 0x3eb   :  { %v430_v44 = vsel %vm427_vm15, %v429_v42, %v425_v43  ;;  %v444_v52 = vor.u32 1.1754944e-38, %v443_v48  ;;  %vm442_vm4 = vcmp.eq.f32.partialorder %v441_v50, 8.507059e+37 }
 0x3ec   :  { %447 = vst [vmem:[#allocation14] sm:$0xff] %v430_v44 }
 0x3ef   :  { %v744_v45 = vpop.eup %743 }
 0x3f0   :  { %v433_v46 = vmul.f32 %v744_v45, %v416_v40  ;;  %vm438_vm1 = vweird.f32 %v744_v45 }
 0x3f1   :  { %vm439_vm3 = vmor %vm437_vm2, %vm438_vm1 }
 0x3f2   :  { %v434_v47 = vsub.f32 1.0, %v433_v46 }
 0x3f4   :  { %v435_v49 = vmul.f32 %v744_v45, %v434_v47 }
 0x3f6   :  { %v436_v51 = vadd.f32 %v744_v45, %v435_v49 }
 0x3f8   :  { %v440_v53 = vsel %vm439_vm3, %v744_v45, %v436_v51 }
 0x3f9   :  { %v445_v54 = vsel %vm442_vm4, %v444_v52, %v440_v53 }
 0x3fa   :  { %448 = vst [vmem:[#allocation14 + $0x18] sm:$0xff] %v445_v54 }
 0x3fb   :  { %660 = dma.vmem_to_hbm [thread:$0]  %s653_s16, 768, %s655_s17, [#allocation4], %s958_s25, %s958_s25, %s959_s3  }
 0x3fc   :  { %945 = dma.done.wait [#allocation4], 768  }
 0x3fd   :  { %946 = vsyncadd [#allocation4], 4294966528 }
 0x3fe   :  { %665 = vsyncpa [#allocation3], 1 }
 0x3ff   :  { %666 = vsyncpa [#allocation6], 1 }
 0x400   :  { %667 = vsyncpa [#allocation9], 1 }
 0x401   :  { %668 = vsyncpa [#allocation12], 1 }
 0x402   :  { %669 = vsyncpa [#allocation4], 1 }

</bundles_post_ra>
